<compile_context>
chip_gen: v7x
topology: tpu7x:2x2x1
jax: 0.10.0
libtpu: 0.0.40
codegen_flags: <defaults>
</compile_context>

<pallas_src>
import functools

import jax
import jax.numpy as jnp
from jax import lax
from jax.experimental import pallas as pl
from jax.experimental.pallas import tpu as pltpu


# ---------------------------------------------------------------------------
# In-kernel building block: 3x3 "shifted-row" convolution + shift + ReLU.
#
# The padded image is a flat [(H+2)*(W+2), Cin] slab.  Output row r is the
# padded-flat position r + (W+2) + 1, so kernel tap (dh, dw) reads rows
# [dh*(W+2)+dw : dh*(W+2)+dw + R].  9 static slices -> 9 bf16 matmuls
# accumulated in f32 on the MXU.
# ---------------------------------------------------------------------------
_TAPS = tuple((dh, dw) for dh in range(3) for dw in range(3))


def _conv3x3_relu(x_ref, w_ref, shift_ref, *, rows, wp, cin):
    cout = w_ref.shape[1]
    acc = jnp.zeros((rows, cout), jnp.float32)
    for t, (dh, dw) in enumerate(_TAPS):
        start = dh * wp + dw
        acc += jnp.dot(x_ref[0, start:start + rows, :],
                       w_ref[t * cin:(t + 1) * cin, :],
                       preferred_element_type=jnp.float32)
    return jnp.maximum(acc + shift_ref[...], 0.0)


def _deconv_kernel(x_ref, w_ref, shift_ref, o_ref, *, rows, wp, cin):
    # ConvTranspose2d(k=4,s=2,p=1)+BN+ReLU as one 3x3 conv whose output
    # channels are (parity ph, parity pw, Cout); unused taps are zero.
    y = _conv3x3_relu(x_ref, w_ref, shift_ref, rows=rows, wp=wp, cin=cin)
    o_ref[0, :, :] = y.astype(o_ref.dtype)


def _stage_kernel(xc_ref, xf_ref, ori_ref,
                  w3c_ref, b3c_ref, w1c_ref, b1c_ref,
                  w3f_ref, b3f_ref, w1f_ref, b1f_ref,
                  wout_ref, bout_ref, o_ref, *, rows, wp, cc, cf, fd):
    bf16 = jnp.bfloat16
    # coarse->fine branch: conv3x3+BN+ReLU -> conv1x1+BN+ReLU (VMEM resident)
    c2f = _conv3x3_relu(xc_ref, w3c_ref, b3c_ref, rows=rows, wp=wp, cin=cc)
    c2f = jnp.maximum(
        jnp.dot(c2f.astype(bf16), w1c_ref[...],
                preferred_element_type=jnp.float32) + b1c_ref[...], 0.0)
    # fine branch
    f2f = _conv3x3_relu(xf_ref, w3f_ref, b3f_ref, rows=rows, wp=wp, cin=cf)
    f2f = jnp.maximum(
        jnp.dot(f2f.astype(bf16), w1f_ref[...],
                preferred_element_type=jnp.float32) + b1f_ref[...], 0.0)
    # final 1x1 conv over concat([c2f, f2f, ori]) as 3 accumulated matmuls
    # (avoids an in-kernel lane concat); +bias, no ReLU, 128-lane output.
    acc = jnp.dot(c2f.astype(bf16), wout_ref[0:fd, :],
                  preferred_element_type=jnp.float32)
    acc += jnp.dot(f2f.astype(bf16), wout_ref[fd:2 * fd, :],
                   preferred_element_type=jnp.float32)
    acc += jnp.dot(ori_ref[0], wout_ref[2 * fd:2 * fd + cf, :],
                   preferred_element_type=jnp.float32)
    acc += bout_ref[...]
    o_ref[0, :, :] = acc.astype(o_ref.dtype)


# ---------------------------------------------------------------------------
# JAX-side layout glue
# ---------------------------------------------------------------------------
def _round_up(x, m):
    return ((x + m - 1) // m) * m


def _pad_flat(x_nhwc):
    """[B,H,W,C] -> spatial zero-pad by 1 -> flat [B,(H+2)*(W+2),C]."""
    b, h, w, c = x_nhwc.shape
    xp = jnp.pad(x_nhwc, ((0, 0), (1, 1), (1, 1), (0, 0)))
    return xp.reshape(b, (h + 2) * (w + 2), c)


def _rows_to_image(rows_arr, h, w):
    """Inverse of the shifted-row layout: [B,R,C] (R=(h-1)*(w+2)+w) -> [B,h,w,C]."""
    b, r, c = rows_arr.shape
    wp = w + 2
    rows_arr = jnp.pad(rows_arr, ((0, 0), (0, h * wp - r), (0, 0)))
    return rows_arr.reshape(b, h, wp, c)[:, :, :w, :]


def deconv_up(x_nhwc, wdec, bdec):
    """ConvTranspose2d(k=4,s=2,p=1)+BN+ReLU. x:[B,Hc,Wc,Cc] -> bf16 [B,2Hc,2Wc,Cc]."""
    b, hc, wc, cc = x_nhwc.shape
    wp = wc + 2
    npix = (hc + 2) * wp
    rows = (hc - 1) * wp + wc
    ndec = wdec.shape[1]
    xpf = _pad_flat(x_nhwc).astype(jnp.bfloat16)
    y = pl.pallas_call(
        functools.partial(_deconv_kernel, rows=rows, wp=wp, cin=cc),
        out_shape=jax.ShapeDtypeStruct((b, rows, ndec), jnp.bfloat16),
        grid_spec=pltpu.PrefetchScalarGridSpec(
            num_scalar_prefetch=0,
            grid=(b,),
            in_specs=[
                pl.BlockSpec((1, npix, cc), lambda i: (i, 0, 0)),
                pl.BlockSpec(wdec.shape, lambda i: (0, 0)),
                pl.BlockSpec(bdec.shape, lambda i: (0, 0)),
            ],
            out_specs=pl.BlockSpec((1, rows, ndec), lambda i: (i, 0, 0)),
        ),
        compiler_params=pltpu.CompilerParams(dimension_semantics=("parallel",)),
    )(xpf, wdec, bdec)
    y = _rows_to_image(y, hc, wc)[..., :4 * cc]          # [B,Hc,Wc,4*Cc]
    y = y.reshape(b, hc, wc, 2, 2, cc)                   # (..., ph, pw, c)
    return jnp.transpose(y, (0, 1, 3, 2, 4, 5)).reshape(b, 2 * hc, 2 * wc, cc)


def stage_main(cu, f_nhwc, q, co):
    """Fused conv3x3->conv1x1 (both branches) + final 1x1 conv, one pallas_call."""
    b, h, w, cc = cu.shape
    cf = f_nhwc.shape[-1]
    wp = w + 2
    npix = (h + 2) * wp
    rows = (h - 1) * wp + w
    fd = q["w1c"].shape[1]
    nout = q["wout"].shape[1]
    xc = _pad_flat(cu).astype(jnp.bfloat16)
    xf = _pad_flat(f_nhwc).astype(jnp.bfloat16)
    # ori rows aligned with the kernel's shifted-row output indexing
    ori = jnp.pad(f_nhwc, ((0, 0), (0, 0), (0, wp - w), (0, 0)))
    ori = ori.reshape(b, h * wp, cf)[:, :rows, :].astype(jnp.bfloat16)
    out = pl.pallas_call(
        functools.partial(_stage_kernel, rows=rows, wp=wp, cc=cc, cf=cf, fd=fd),
        out_shape=jax.ShapeDtypeStruct((b, rows, nout), jnp.float32),
        grid_spec=pltpu.PrefetchScalarGridSpec(
            num_scalar_prefetch=0,
            grid=(b,),
            in_specs=[
                pl.BlockSpec((1, npix, cc), lambda i: (i, 0, 0)),
                pl.BlockSpec((1, npix, cf), lambda i: (i, 0, 0)),
                pl.BlockSpec((1, rows, cf), lambda i: (i, 0, 0)),
                pl.BlockSpec(q["w3c"].shape, lambda i: (0, 0)),
                pl.BlockSpec(q["b3c"].shape, lambda i: (0, 0)),
                pl.BlockSpec(q["w1c"].shape, lambda i: (0, 0)),
                pl.BlockSpec(q["b1c"].shape, lambda i: (0, 0)),
                pl.BlockSpec(q["w3f"].shape, lambda i: (0, 0)),
                pl.BlockSpec(q["b3f"].shape, lambda i: (0, 0)),
                pl.BlockSpec(q["w1f"].shape, lambda i: (0, 0)),
                pl.BlockSpec(q["b1f"].shape, lambda i: (0, 0)),
                pl.BlockSpec(q["wout"].shape, lambda i: (0, 0)),
                pl.BlockSpec(q["bout"].shape, lambda i: (0, 0)),
            ],
            out_specs=pl.BlockSpec((1, rows, nout), lambda i: (i, 0, 0)),
        ),
        compiler_params=pltpu.CompilerParams(dimension_semantics=("parallel",)),
    )(xc, xf, ori, q["w3c"], q["b3c"], q["w1c"], q["b1c"],
      q["w3f"], q["b3f"], q["w1f"], q["b1f"], q["wout"], q["bout"])
    return _rows_to_image(out, h, w)[..., :co]            # [B,H,W,Co] f32


@functools.partial(jax.jit, static_argnums=(3,))
def crossview_forward(prep, c, f, stage_idx):
    """c: [B,Gc,Dc,H/2,W/2], f: [B,Gf,Df,H,W]  ->  [B,Gf+2,Df,H,W]."""
    q = prep[stage_idx]
    b, gc, dc, hc, wc = c.shape
    _, gf, df, h, w = f.shape
    cc, cf, co = gc * dc, gf * df, (gf + 2) * df
    c_nhwc = jnp.transpose(c.reshape(b, cc, hc, wc), (0, 2, 3, 1))
    f_nhwc = jnp.transpose(f.reshape(b, cf, h, w), (0, 2, 3, 1))
    cu = deconv_up(c_nhwc, q["wdec"], q["bdec"])          # bf16 [B,H,W,Cc]
    y = stage_main(cu, f_nhwc, q, co)                     # f32 [B,H,W,Co]
    return jnp.transpose(y, (0, 3, 1, 2)).reshape(b, gf + 2, df, h, w)


# ---------------------------------------------------------------------------
# Parameter construction (synthetic, deterministic) and kernel-ready folding
# ---------------------------------------------------------------------------
def _bn_fold(key, cout, eps=1e-5):
    kg, kb, km, kv = jax.random.split(key, 4)
    gamma = 1.0 + 0.1 * jax.random.normal(kg, (cout,), jnp.float32)
    beta = 0.1 * jax.random.normal(kb, (cout,), jnp.float32)
    mean = 0.1 * jax.random.normal(km, (cout,), jnp.float32)
    var = jnp.abs(1.0 + 0.1 * jax.random.normal(kv, (cout,), jnp.float32))
    scale = gamma / jnp.sqrt(var + eps)
    shift = beta - mean * scale
    return scale, shift


def make_params(seed=0, cg=(8, 8, 4), fg=(8, 4, 4), cd=(8, 8, 4), fd=(8, 4, 4)):
    root = jax.random.PRNGKey(seed + 1234)
    params = {}
    for s in (1, 2, 3):
        i = s - 1
        Cc = cg[i] * cd[i]
        Cf = fg[i] * fd[i]
        Co = (fg[i] + 2) * fd[i]
        ks = jax.random.split(jax.random.fold_in(root, s), 12)
        p = {}
        p["up_w"] = 0.05 * jax.random.normal(ks[0], (Cc, Cc, 4, 4), jnp.float32)
        p["up_s"], p["up_b"] = _bn_fold(ks[1], Cc)
        p["c3_w"] = 0.05 * jax.random.normal(ks[2], (cd[i], Cc, 3, 3), jnp.float32)
        p["c3_s"], p["c3_b"] = _bn_fold(ks[3], cd[i])
        p["c1_w"] = 0.05 * jax.random.normal(ks[4], (fd[i], cd[i], 1, 1), jnp.float32)
        p["c1_s"], p["c1_b"] = _bn_fold(ks[5], fd[i])
        p["f3_w"] = 0.05 * jax.random.normal(ks[6], (fd[i], Cf, 3, 3), jnp.float32)
        p["f3_s"], p["f3_b"] = _bn_fold(ks[7], fd[i])
        p["f1_w"] = 0.05 * jax.random.normal(ks[8], (fd[i], fd[i], 1, 1), jnp.float32)
        p["f1_s"], p["f1_b"] = _bn_fold(ks[9], fd[i])
        p["out_w"] = 0.05 * jax.random.normal(ks[10], (Co, Co, 1, 1), jnp.float32)
        p["out_b"] = 0.02 * jax.random.normal(ks[11], (Co,), jnp.float32)
        params[s] = p
    return params


# (parity, tap index dh/dw) -> ConvTranspose kernel index (None = unused tap)
_DECONV_KMAP = {(0, 0): 3, (0, 1): 1, (1, 1): 2, (1, 2): 0}


def fold_conv3x3(w_oihw, scale):
    cout, cin = w_oihw.shape[:2]
    w = jnp.transpose(w_oihw, (2, 3, 1, 0)).reshape(9 * cin, cout)  # tap-major rows
    return (w * scale[None, :]).astype(jnp.bfloat16)


def fold_conv1x1(w_oihw, scale):
    cout, cin = w_oihw.shape[:2]
    return (w_oihw.reshape(cout, cin).T * scale[None, :]).astype(jnp.bfloat16)


def fold_deconv(w_iohw, scale, ncols):
    """PyTorch ConvTranspose weight [Cin,Cout,4,4] -> [9*Cin, ncols] tap-major
    matrix whose columns are (ph, pw, Cout), BN scale folded, zero padded."""
    cin, cout = w_iohw.shape[:2]
    blocks = []
    for dh in range(3):
        for dw in range(3):
            parts = []
            for ph in range(2):
                for pw in range(2):
                    kh = _DECONV_KMAP.get((ph, dh))
                    kw = _DECONV_KMAP.get((pw, dw))
                    if kh is None or kw is None:
                        parts.append(jnp.zeros((cin, cout), jnp.float32))
                    else:
                        parts.append(w_iohw[:, :, kh, kw] * scale[None, :])
            blocks.append(jnp.concatenate(parts, axis=1))    # [Cin, 4*Cout]
    w = jnp.concatenate(blocks, axis=0)                      # [9*Cin, 4*Cout]
    w = jnp.pad(w, ((0, 0), (0, ncols - 4 * cout)))
    return w.astype(jnp.bfloat16)


def prepare_stage(p, stage_idx):
    cc = p["up_w"].shape[0]
    co = p["out_w"].shape[0]
    q = {}
    ndec = _round_up(4 * cc, 128)
    q["wdec"] = fold_deconv(p["up_w"], p["up_s"], ndec)
    q["bdec"] = jnp.pad(jnp.tile(p["up_b"], 4),
                        (0, ndec - 4 * cc)).reshape(1, ndec).astype(jnp.float32)
    q["w3c"] = fold_conv3x3(p["c3_w"], p["c3_s"])
    q["b3c"] = p["c3_b"].reshape(1, -1).astype(jnp.float32)
    q["w1c"] = fold_conv1x1(p["c1_w"], p["c1_s"])
    q["b1c"] = p["c1_b"].reshape(1, -1).astype(jnp.float32)
    if stage_idx == 1:
        # stage 1 applies conv0_0c to both the coarse and the fine branch
        q["w3f"], q["b3f"] = q["w3c"], q["b3c"]
        q["w1f"], q["b1f"] = q["w1c"], q["b1c"]
    else:
        q["w3f"] = fold_conv3x3(p["f3_w"], p["f3_s"])
        q["b3f"] = p["f3_b"].reshape(1, -1).astype(jnp.float32)
        q["w1f"] = fold_conv1x1(p["f1_w"], p["f1_s"])
        q["b1f"] = p["f1_b"].reshape(1, -1).astype(jnp.float32)
    nout = _round_up(co, 128)
    wout = p["out_w"].reshape(co, co).T
    q["wout"] = jnp.pad(wout, ((0, 0), (0, nout - co))).astype(jnp.bfloat16)
    q["bout"] = jnp.pad(p["out_b"], (0, nout - co)).reshape(1, nout).astype(jnp.float32)
    return q


# ---------------------------------------------------------------------------
# Pure-JAX f32 reference (for numerical validation of the Pallas path)
# ---------------------------------------------------------------------------
def ref_conv2d(x, w_oihw, scale, shift, relu, padding):
    y = lax.conv_general_dilated(x, w_oihw, (1, 1), [(padding, padding)] * 2,
                                 dimension_numbers=("NCHW", "OIHW", "NCHW"))
    y = y * scale[None, :, None, None] + shift[None, :, None, None]
    return jnp.maximum(y, 0.0) if relu else y


def ref_deconv(x, w_iohw, scale, shift):
    # ConvTranspose2d(k4,s2,p1) == conv(lhs_dilation=2, pad=2, flipped kernel)
    wf = jnp.transpose(jnp.flip(w_iohw, axis=(2, 3)), (1, 0, 2, 3))
    y = lax.conv_general_dilated(x, wf, (1, 1), [(2, 2), (2, 2)],
                                 lhs_dilation=(2, 2),
                                 dimension_numbers=("NCHW", "OIHW", "NCHW"))
    y = y * scale[None, :, None, None] + shift[None, :, None, None]
    return jnp.maximum(y, 0.0)


def ref_forward(raw, c, f, stage_idx):
    p = raw[stage_idx]
    b, gc, dc, hc, wc = c.shape
    _, gf, df, h, w = f.shape
    cvol = c.reshape(b, gc * dc, hc, wc)
    fvol = f.reshape(b, gf * df, h, w)
    cu = ref_deconv(cvol, p["up_w"], p["up_s"], p["up_b"])
    c2f = ref_conv2d(cu, p["c3_w"], p["c3_s"], p["c3_b"], True, 1)
    c2f = ref_conv2d(c2f, p["c1_w"], p["c1_s"], p["c1_b"], True, 0)
    if stage_idx == 1:
        f2f = ref_conv2d(fvol, p["c3_w"], p["c3_s"], p["c3_b"], True, 1)
        f2f = ref_conv2d(f2f, p["c1_w"], p["c1_s"], p["c1_b"], True, 0)
    else:
        f2f = ref_conv2d(fvol, p["f3_w"], p["f3_s"], p["f3_b"], True, 1)
        f2f = ref_conv2d(f2f, p["f1_w"], p["f1_s"], p["f1_b"], True, 0)
    cat = jnp.concatenate([c2f, f2f, fvol], axis=1)
    out = lax.conv_general_dilated(cat, p["out_w"], (1, 1), [(0, 0), (0, 0)],
                                   dimension_numbers=("NCHW", "OIHW", "NCHW"))
    out = out + p["out_b"][None, :, None, None]
    return out.reshape(b, gf + 2, df, h, w)


def _assert_close(got, ref, tol, name):
    got = jnp.asarray(got, jnp.float32)
    ref = jnp.asarray(ref, jnp.float32)
    err = float(jnp.max(jnp.abs(got - ref)))
    scale = float(jnp.max(jnp.abs(ref)))
    limit = tol * max(scale, 1.0)  # bf16-operand tolerance, set deliberately
    assert err <= limit, f"{name}: max|diff|={err:.4g} > {limit:.4g} (ref scale={scale:.4g})"


# ---------------------------------------------------------------------------
if __name__ == "__main__":
    key = jax.random.PRNGKey(0)
    cg, fg, cd, fd = (8, 8, 4), (8, 4, 4), (8, 8, 4), (8, 4, 4)
    B, H, W = 2, 16, 16
    Hc, Wc = H // 2, W // 2

    raw = make_params(seed=0, cg=cg, fg=fg, cd=cd, fd=fd)
    prep = {s: prepare_stage(raw[s], s) for s in (1, 2, 3)}

    # --- numerical check: fused deconv kernel vs. lax transposed-conv ref ---
    kchk = jax.random.fold_in(key, 77)
    Cc1 = cg[0] * cd[0]
    c_chk = jax.random.normal(kchk, (B, Cc1, Hc, Wc), jnp.float32)
    ref_cu = ref_deconv(c_chk, raw[1]["up_w"], raw[1]["up_s"], raw[1]["up_b"])
    got_cu = deconv_up(jnp.transpose(c_chk, (0, 2, 3, 1)),
                       prep[1]["wdec"], prep[1]["bdec"])
    got_cu = jnp.transpose(got_cu.astype(jnp.float32), (0, 3, 1, 2))
    _assert_close(got_cu, ref_cu, tol=0.03, name="deconv")

    # --- full forward per stage, validated against the pure-JAX reference ---
    for s in (1, 2, 3):
        i = s - 1
        kc, kf = jax.random.split(jax.random.fold_in(key, s))
        c = jax.random.normal(kc, (B, cg[i], cd[i], Hc, Wc), jnp.float32)
        f = jax.random.normal(kf, (B, fg[i], fd[i], H, W), jnp.float32)
        out = crossview_forward(prep, c, f, s)
        out = jax.block_until_ready(out)
        assert out.shape == (B, fg[i] + 2, fd[i], H, W), out.shape
        assert bool(jnp.all(jnp.isfinite(out)))
        ref = ref_forward(raw, c, f, s)
        _assert_close(out, ref, tol=0.04, name=f"stage{s}")

    print("KERNEL_OK")
</pallas_src>

<mosaic_0001>
module attributes {stable_mosaic.version = 11 : i64} {
  func.func @_deconv_kernel(%arg0: i32, %arg1: memref<1x100x64xbf16, #tpu.memory_space<vmem>>, %arg2: memref<576x256xbf16, #tpu.memory_space<vmem>>, %arg3: memref<1x256xf32, #tpu.memory_space<vmem>>, %arg4: memref<1x78x256xbf16, #tpu.memory_space<vmem>>) attributes {dimension_semantics = [#tpu.dimension_semantics<parallel>], iteration_bounds = array<i64: 2>, scalar_prefetch = 0 : i64, scratch_operands = 0 : i64, tpu.core_type = #tpu.core_type<tc>, window_params = [{transform_indices = @transform_0, window_bounds = array<i64: 1, 100, 64>}, {pipeline_mode = #tpu.pipeline_mode<synchronous>, transform_indices = @transform_1, window_bounds = array<i64: 576, 256>}, {pipeline_mode = #tpu.pipeline_mode<synchronous>, transform_indices = @transform_2, window_bounds = array<i64: 1, 256>}, {transform_indices = @transform_3, window_bounds = array<i64: 1, 78, 256>}]} {
    %cst = arith.constant 0.000000e+00 : f32
    %0 = vector.broadcast %cst : f32 to vector<78x256xf32>
    %c0 = arith.constant 0 : index
    %c0_0 = arith.constant 0 : index
    %c0_1 = arith.constant 0 : index
    %1 = vector.load %arg1[%c0, %c0_0, %c0_1] : memref<1x100x64xbf16, #tpu.memory_space<vmem>>, vector<1x78x64xbf16>
    %2 = vector.shape_cast %1 : vector<1x78x64xbf16> to vector<78x64xbf16>
    %c0_2 = arith.constant 0 : index
    %c0_3 = arith.constant 0 : index
    %3 = vector.load %arg2[%c0_2, %c0_3] : memref<576x256xbf16, #tpu.memory_space<vmem>>, vector<64x256xbf16>
    %cst_4 = arith.constant dense<0.000000e+00> : vector<78x256xf32>
    %4 = tpu.matmul %2, %3, %cst_4 {dimension_numbers = #tpu.dot_dimension_numbers<[1], [0], [0], [1], [0, 0, 1, 1], [], []>} : vector<78x64xbf16>, vector<64x256xbf16>, vector<78x256xf32> -> vector<78x256xf32>
    %5 = arith.addf %0, %4 : vector<78x256xf32>
    %c0_5 = arith.constant 0 : index
    %c1 = arith.constant 1 : index
    %c0_6 = arith.constant 0 : index
    %6 = vector.load %arg1[%c0_5, %c1, %c0_6] : memref<1x100x64xbf16, #tpu.memory_space<vmem>>, vector<1x78x64xbf16>
    %7 = vector.shape_cast %6 : vector<1x78x64xbf16> to vector<78x64xbf16>
    %c64 = arith.constant 64 : index
    %c0_7 = arith.constant 0 : index
    %8 = vector.load %arg2[%c64, %c0_7] : memref<576x256xbf16, #tpu.memory_space<vmem>>, vector<64x256xbf16>
    %cst_8 = arith.constant dense<0.000000e+00> : vector<78x256xf32>
    %9 = tpu.matmul %7, %8, %cst_8 {dimension_numbers = #tpu.dot_dimension_numbers<[1], [0], [0], [1], [0, 0, 1, 1], [], []>} : vector<78x64xbf16>, vector<64x256xbf16>, vector<78x256xf32> -> vector<78x256xf32>
    %10 = arith.addf %5, %9 : vector<78x256xf32>
    %c0_9 = arith.constant 0 : index
    %c2 = arith.constant 2 : index
    %c0_10 = arith.constant 0 : index
    %11 = vector.load %arg1[%c0_9, %c2, %c0_10] : memref<1x100x64xbf16, #tpu.memory_space<vmem>>, vector<1x78x64xbf16>
    %12 = vector.shape_cast %11 : vector<1x78x64xbf16> to vector<78x64xbf16>
    %c128 = arith.constant 128 : index
    %c0_11 = arith.constant 0 : index
    %13 = vector.load %arg2[%c128, %c0_11] : memref<576x256xbf16, #tpu.memory_space<vmem>>, vector<64x256xbf16>
    %cst_12 = arith.constant dense<0.000000e+00> : vector<78x256xf32>
    %14 = tpu.matmul %12, %13, %cst_12 {dimension_numbers = #tpu.dot_dimension_numbers<[1], [0], [0], [1], [0, 0, 1, 1], [], []>} : vector<78x64xbf16>, vector<64x256xbf16>, vector<78x256xf32> -> vector<78x256xf32>
    %15 = arith.addf %10, %14 : vector<78x256xf32>
    %c0_13 = arith.constant 0 : index
    %c10 = arith.constant 10 : index
    %c0_14 = arith.constant 0 : index
    %16 = vector.load %arg1[%c0_13, %c10, %c0_14] : memref<1x100x64xbf16, #tpu.memory_space<vmem>>, vector<1x78x64xbf16>
    %17 = vector.shape_cast %16 : vector<1x78x64xbf16> to vector<78x64xbf16>
    %c192 = arith.constant 192 : index
    %c0_15 = arith.constant 0 : index
    %18 = vector.load %arg2[%c192, %c0_15] : memref<576x256xbf16, #tpu.memory_space<vmem>>, vector<64x256xbf16>
    %cst_16 = arith.constant dense<0.000000e+00> : vector<78x256xf32>
    %19 = tpu.matmul %17, %18, %cst_16 {dimension_numbers = #tpu.dot_dimension_numbers<[1], [0], [0], [1], [0, 0, 1, 1], [], []>} : vector<78x64xbf16>, vector<64x256xbf16>, vector<78x256xf32> -> vector<78x256xf32>
    %20 = arith.addf %15, %19 : vector<78x256xf32>
    %c0_17 = arith.constant 0 : index
    %c11 = arith.constant 11 : index
    %c0_18 = arith.constant 0 : index
    %21 = vector.load %arg1[%c0_17, %c11, %c0_18] : memref<1x100x64xbf16, #tpu.memory_space<vmem>>, vector<1x78x64xbf16>
    %22 = vector.shape_cast %21 : vector<1x78x64xbf16> to vector<78x64xbf16>
    %c256 = arith.constant 256 : index
    %c0_19 = arith.constant 0 : index
    %23 = vector.load %arg2[%c256, %c0_19] : memref<576x256xbf16, #tpu.memory_space<vmem>>, vector<64x256xbf16>
    %cst_20 = arith.constant dense<0.000000e+00> : vector<78x256xf32>
    %24 = tpu.matmul %22, %23, %cst_20 {dimension_numbers = #tpu.dot_dimension_numbers<[1], [0], [0], [1], [0, 0, 1, 1], [], []>} : vector<78x64xbf16>, vector<64x256xbf16>, vector<78x256xf32> -> vector<78x256xf32>
    %25 = arith.addf %20, %24 : vector<78x256xf32>
    %c0_21 = arith.constant 0 : index
    %c12 = arith.constant 12 : index
    %c0_22 = arith.constant 0 : index
    %26 = vector.load %arg1[%c0_21, %c12, %c0_22] : memref<1x100x64xbf16, #tpu.memory_space<vmem>>, vector<1x78x64xbf16>
    %27 = vector.shape_cast %26 : vector<1x78x64xbf16> to vector<78x64xbf16>
    %c320 = arith.constant 320 : index
    %c0_23 = arith.constant 0 : index
    %28 = vector.load %arg2[%c320, %c0_23] : memref<576x256xbf16, #tpu.memory_space<vmem>>, vector<64x256xbf16>
    %cst_24 = arith.constant dense<0.000000e+00> : vector<78x256xf32>
    %29 = tpu.matmul %27, %28, %cst_24 {dimension_numbers = #tpu.dot_dimension_numbers<[1], [0], [0], [1], [0, 0, 1, 1], [], []>} : vector<78x64xbf16>, vector<64x256xbf16>, vector<78x256xf32> -> vector<78x256xf32>
    %30 = arith.addf %25, %29 : vector<78x256xf32>
    %c0_25 = arith.constant 0 : index
    %c20 = arith.constant 20 : index
    %c0_26 = arith.constant 0 : index
    %31 = vector.load %arg1[%c0_25, %c20, %c0_26] : memref<1x100x64xbf16, #tpu.memory_space<vmem>>, vector<1x78x64xbf16>
    %32 = vector.shape_cast %31 : vector<1x78x64xbf16> to vector<78x64xbf16>
    %c384 = arith.constant 384 : index
    %c0_27 = arith.constant 0 : index
    %33 = vector.load %arg2[%c384, %c0_27] : memref<576x256xbf16, #tpu.memory_space<vmem>>, vector<64x256xbf16>
    %cst_28 = arith.constant dense<0.000000e+00> : vector<78x256xf32>
    %34 = tpu.matmul %32, %33, %cst_28 {dimension_numbers = #tpu.dot_dimension_numbers<[1], [0], [0], [1], [0, 0, 1, 1], [], []>} : vector<78x64xbf16>, vector<64x256xbf16>, vector<78x256xf32> -> vector<78x256xf32>
    %35 = arith.addf %30, %34 : vector<78x256xf32>
    %c0_29 = arith.constant 0 : index
    %c21 = arith.constant 21 : index
    %c0_30 = arith.constant 0 : index
    %36 = vector.load %arg1[%c0_29, %c21, %c0_30] : memref<1x100x64xbf16, #tpu.memory_space<vmem>>, vector<1x78x64xbf16>
    %37 = vector.shape_cast %36 : vector<1x78x64xbf16> to vector<78x64xbf16>
    %c448 = arith.constant 448 : index
    %c0_31 = arith.constant 0 : index
    %38 = vector.load %arg2[%c448, %c0_31] : memref<576x256xbf16, #tpu.memory_space<vmem>>, vector<64x256xbf16>
    %cst_32 = arith.constant dense<0.000000e+00> : vector<78x256xf32>
    %39 = tpu.matmul %37, %38, %cst_32 {dimension_numbers = #tpu.dot_dimension_numbers<[1], [0], [0], [1], [0, 0, 1, 1], [], []>} : vector<78x64xbf16>, vector<64x256xbf16>, vector<78x256xf32> -> vector<78x256xf32>
    %40 = arith.addf %35, %39 : vector<78x256xf32>
    %c0_33 = arith.constant 0 : index
    %c22 = arith.constant 22 : index
    %c0_34 = arith.constant 0 : index
    %41 = vector.load %arg1[%c0_33, %c22, %c0_34] : memref<1x100x64xbf16, #tpu.memory_space<vmem>>, vector<1x78x64xbf16>
    %42 = vector.shape_cast %41 : vector<1x78x64xbf16> to vector<78x64xbf16>
    %c512 = arith.constant 512 : index
    %c0_35 = arith.constant 0 : index
    %43 = vector.load %arg2[%c512, %c0_35] : memref<576x256xbf16, #tpu.memory_space<vmem>>, vector<64x256xbf16>
    %cst_36 = arith.constant dense<0.000000e+00> : vector<78x256xf32>
    %44 = tpu.matmul %42, %43, %cst_36 {dimension_numbers = #tpu.dot_dimension_numbers<[1], [0], [0], [1], [0, 0, 1, 1], [], []>} : vector<78x64xbf16>, vector<64x256xbf16>, vector<78x256xf32> -> vector<78x256xf32>
    %45 = arith.addf %40, %44 : vector<78x256xf32>
    %c0_37 = arith.constant 0 : index
    %c0_38 = arith.constant 0 : index
    %46 = vector.load %arg3[%c0_37, %c0_38] : memref<1x256xf32, #tpu.memory_space<vmem>>, vector<1x256xf32>
    %47 = vector.broadcast %46 : vector<1x256xf32> to vector<78x256xf32>
    %48 = arith.addf %45, %47 : vector<78x256xf32>
    %cst_39 = arith.constant 0.000000e+00 : f32
    %49 = vector.broadcast %cst_39 : f32 to vector<78x256xf32>
    %50 = arith.maximumf %48, %49 : vector<78x256xf32>
    %51 = arith.truncf %50 : vector<78x256xf32> to vector<78x256xbf16>
    %c0_40 = arith.constant 0 : index
    %c0_41 = arith.constant 0 : index
    %c0_42 = arith.constant 0 : index
    %52 = vector.load %arg4[%c0_40, %c0_41, %c0_42] : memref<1x78x256xbf16, #tpu.memory_space<vmem>>, vector<1x78x256xbf16>
    %53 = vector.shape_cast %52 : vector<1x78x256xbf16> to vector<78x256xbf16>
    %54 = vector.shape_cast %51 : vector<78x256xbf16> to vector<1x78x256xbf16>
    tpu.vector_store %arg4[%c0_40, %c0_41, %c0_42], %54 {strides = array<i32>} : memref<1x78x256xbf16, #tpu.memory_space<vmem>>, vector<1x78x256xbf16>,
    return
  }
  func.func @transform_0(%arg0: i32) -> (i32, i32, i32) {
    %c0_i32 = arith.constant 0 : i32
    %c0_i32_0 = arith.constant 0 : i32
    %c0_i32_1 = arith.constant 0 : i32
    return %arg0, %c0_i32, %c0_i32_0 : i32, i32, i32
  }
  func.func @transform_1(%arg0: i32) -> (i32, i32) {
    %c0_i32 = arith.constant 0 : i32
    %c0_i32_0 = arith.constant 0 : i32
    %c0_i32_1 = arith.constant 0 : i32
    return %c0_i32, %c0_i32_0 : i32, i32
  }
  func.func @transform_2(%arg0: i32) -> (i32, i32) {
    %c0_i32 = arith.constant 0 : i32
    %c0_i32_0 = arith.constant 0 : i32
    %c0_i32_1 = arith.constant 0 : i32
    return %c0_i32, %c0_i32_0 : i32, i32
  }
  func.func @transform_3(%arg0: i32) -> (i32, i32, i32) {
    %c0_i32 = arith.constant 0 : i32
    %c0_i32_0 = arith.constant 0 : i32
    %c0_i32_1 = arith.constant 0 : i32
    return %arg0, %c0_i32, %c0_i32_0 : i32, i32, i32
  }
}

</mosaic_0001>

<bundles_post_ra>
// kernel: tpu_custom_call.1
= control target key start
LH: loop header
LB: loop body
LE: loop exit
PB: predicated region body
PF: predicated region fallthrough
CT: control target
= control target key end

     0   :  { %8 = vsyncpa [#allocation3], 0  ;;  %s2759_s12 = smov 0   ;;  %s3223_s0 = inlined_call_operand.vmem [shape: bf16[2,100,64], index: 0, kind: input, shape index: {}]   ;;  %s3224_s1 = inlined_call_operand.hbm [shape: bf16[576,256], index: 1, kind: input, shape index: {}]   ;;  %s3225_s2 = inlined_call_operand.vmem [shape: f32[1,256], index: 2, kind: input, shape index: {}]   ;;  %s3226_s3 = inlined_call_operand.vmem [shape: bf16[2,78,256], index: 3, kind: output, shape index: {}]  }
   0x1 LB: > { %s2765_s13 = sadd.s32 4294967295, %s2733_s12   ;;  %p2195_p0 = scmp.ge.s32.totalorder %s2733_s12, 1  ;;  %s2733_s12 = sphi %s2759_s12, %s14_s12  }
   0x2   : > { %p113_p1 = scmp.lt.s32.totalorder %s2733_s12, 3  ;;  %s2735_s14 = smov [#allocation2]  }
   0x3   : > { %s125_s15 = sshll.u32 %s2735_s14, 4  ;;  %p3227_p3 = scmp.eq.s32.totalorder %s2765_s13, 0  ;;  %s126_s15 = int_to_ptr.vmem [resolvable:$true] %s125_s15 }
   0x4   : > { %p2769_p2 = pnand %p2195_p0, %p113_p1  ;;  %s2695_s20 = scalar_lea.hbm %s3224_s1, 9216 }
   0x5   : > { %p2696_p6 = scmp.ne.s32.totalorder %s3224_s1, %s2695_s20  ;;  %p2702_p10 = scmp.lt.u32.totalorder %s2695_s20, %s3224_s1 }
   0x6   : > { %s3229_s16 = scalar_select %p2769_p2, 1, 0 }
   0x7   : > { %p2542_p4 = pneg %p2769_p2 }
   0x9   : > { %p2778_p5 = pnand %p3227_p3, %p2542_p4 }
   0xb   : > { %p2697_p7 = pneg %p2778_p5 }
   0xd   : > { %p2698_p8 = pnand %p2697_p7, %p2696_p6 }
   0xf   : > { %p2699_p9 = pneg %p2698_p8 }
  0x11   : > { %p2704_p11 = pnand %p2702_p10, %p2699_p9 }
  0x13   : > { %2707 = shalt.err (!%p2704_p11)
}
  0x14   : > { %s2708_s25 = scalar_lea.vmem %s126_s15, 9216  ;;  %p2716_p1 = scmp.lt.s32.totalorder %s126_s15, %s126_s15 }
  0x15   : > { %p2709_p12 = scmp.ne.s32.totalorder %s126_s15, %s2708_s25  ;;  %p2717_p4 = scmp.lt.s32.totalorder %s2708_s25, %s2708_s25 }
  0x17   : > { %p2711_p13 = pnand %p2709_p12, %p2697_p7  ;;  %p2718_p3 = por %p2717_p4, %p2716_p1 }
  0x19   : > { %p2712_p0 = pneg %p2711_p13 }
  0x1b   : > { %p2719_p2 = pnand %p2718_p3, %p2712_p0 }
  0x1d   : > { %2722 = shalt.err (!%p2719_p2)
}
  0x1e   : > { %s2736_s26 = smov 128   ;;  %s2737_s27 = smov 8  }
  0x1f   : > { %2545 = dma.hbm_to_vmem [thread:$0]  (!%p2778_p5), %s3224_s1, 9216, %s126_s15, [#allocation3], %s2736_s26, %s2736_s26, %s2737_s27  }
  0x20   : > { %p3231_p6 = scmp.ne.s32.totalorder %s3229_s16, 0 }
  0x21   : > { %p3232_p8 = scmp.eq.s32.totalorder (!%p3231_p6), %s2765_s13, 0 }
  0x22   : > { %152 = sbr.rel (%p3231_p6) target bundleno = 460 (0x1cc), region = 32 }
  0x29   : > { %2728 = dma.done.wait (%p3232_p8), [#allocation3], 9216   ;;  %p3233_p7 = pmov %p3232_p8 }
  0x2a   : > { %v2738_v0 = vmov 0   ;;  %p176_p2 = scmp.lt.s32.totalorder %s2765_s13, 1  ;;  %v2560_v1 = vld [vmem:[#allocation2 + $0x44] ss:$8 sps:$4 sm:$0xff]   ;;  %v2564_v3 = vld [vmem:[#allocation2 + $0x40] ss:$8 sps:$4 sm:$0xff]  }
  0x2b   : > { %2730 = vsyncadd (%p3233_p7), [#allocation3], 4294958080  ;;  %367 = vmatprep.mubr.bf16.mxu1 %v2738_v0  ;;  %1129 = vmatprep.mubr.bf16.mxu0 %v2738_v0  ;;  %v2810_v2 = vld [vmem:[#allocation2 + $0x104] ss:$8 sps:$4 sm:$0xff]   ;;  %v2812_v4 = vld [vmem:[#allocation2 + $0x100] ss:$8 sps:$4 sm:$0xff]  }
  0x2c   : > { %s3235_s13 = smov (!%p176_p2, %s2765_s13), 1  ;;  %335 = vmatprep.subr.bf16.mxu1 %v2560_v1  ;;  %1097 = vmatprep.subr.bf16.mxu0 %v2810_v2  ;;  %v2566_v5 = vld [vmem:[#allocation2 + $0x54] ss:$8 sps:$4 sm:$0xff]   ;;  %v2570_v7 = vld [vmem:[#allocation2 + $0x50] ss:$8 sps:$4 sm:$0xff]   ;;  %vm319_vm2 = vcmask 523264  }
  0x2d   : > { %s2536_s30 = smul.u32 52, %s3235_s13  ;;  %336 = vmatpush1.bf16.msra.mxu1 %v2564_v3  ;;  %1098 = vmatpush1.bf16.msra.mxu0 %v2812_v4  ;;  %v2817_v6 = vld [vmem:[#allocation2 + $0x114] ss:$8 sps:$4 sm:$0xff]   ;;  %v2819_v8 = vld [vmem:[#allocation2 + $0x110] ss:$8 sps:$4 sm:$0xff]   ;;  %vm567_vm3 = vcmask 1046528  }
  0x2e   : > { %337 = vmatprep.subr.bf16.mxu1 %v2566_v5  ;;  %1099 = vmatprep.subr.bf16.mxu0 %v2817_v6  ;;  %v2572_v9 = vld [vmem:[#allocation2 + $0x64] ss:$8 sps:$4 sm:$0xff]   ;;  %v2576_v11 = vld [vmem:[#allocation2 + $0x60] ss:$8 sps:$4 sm:$0xff]   ;;  %v2578_v13 = vld [vmem:[#allocation2 + $0x74] ss:$8 sps:$4 sm:$0xff]  }
  0x2f   : > { %v2822_v10 = vld [vmem:[#allocation2 + $0x124] ss:$8 sps:$4 sm:$0xff]   ;;  %v2824_v12 = vld [vmem:[#allocation2 + $0x120] ss:$8 sps:$4 sm:$0xff]   ;;  %s2829_s6 = scalar_lea.vmem %s3223_s0, %s2536_s30  ;;  %v2833_v14 = vld [vmem:[#allocation2 + $0x134] ss:$8 sps:$4 sm:$0xff]  }
  0x30   : > { %v2582_v15 = vld [vmem:[#allocation2 + $0x70] ss:$8 sps:$4 sm:$0xff]   ;;  %v187_v17 = vld [vmem:[%s2829_s6] sm:$0xf]  ;;  %v2839_v18 = vld [vmem:[%s2829_s6 + $0x4] sm:$0xf] }
  0x31   : > { %338 = vmatpush1.bf16.msra.mxu1 %v2570_v7  ;;  %1100 = vmatpush1.bf16.msra.mxu0 %v2819_v8  ;;  %v2835_v16 = vld [vmem:[#allocation2 + $0x130] ss:$8 sps:$4 sm:$0xff]   ;;  %v2843_v19 = vcombine.low %v187_v17, %v2839_v18  ;;  %v2846_v20 = vld [vmem:[%s2829_s6 + $0x8] sm:$0xff]   ;;  %vm239_vm0 = vsmask.f32 7424  ;;  %vm1212_vm4 = vcmask 1045504  }
  0x32   : > { %339 = vmatprep.subr.bf16.mxu1 %v2572_v9  ;;  %1101 = vmatprep.subr.bf16.mxu0 %v2822_v10  ;;  %v2588_v21 = vld [vmem:[#allocation2 + $0x4] ss:$8 sps:$4 sm:$0xff]   ;;  %vm992_vm1 = vsmask.f32 6400  ;;  %v248_v25 = vshll.u32 %v2846_v20, 16  ;;  %v2864_v40 = vld [vmem:[%s2829_s6 + $0x10] sm:$0xff]  }
  0x33   : > { %v945_v22 = vld [vmem:[%s2829_s6 + $0x4] sm:$0xe]  ;;  %v241_v23 = vshrl.u32 %v2843_v19, 16  ;;  %v243_v24 = vshll.u32 %v2843_v19, 16  ;;  %v2854_v26 = vld [vmem:[%s2829_s6 + $0x8] sm:$0xf] }
  0x34   : > { %v2857_v27 = vld [vmem:[%s2829_s6 + $0xc] sm:$0xff]   ;;  %v2266_v28 = vcombine.low %v945_v22, %v2854_v26  ;;  %v250_v30 = vrot.slane %v248_v25, 1  ;;  %v2586_v33 = vld [vmem:[#allocation2] ss:$8 sps:$4 sm:$0xff]   ;;  %v252_v41 = vshrl.u32 %v2846_v20, 16  ;;  %v256_v47 = vshll.u32 %v2864_v40, 16 }
  0x35   : > { %340 = vmatpush1.bf16.msra.mxu1 %v2576_v11  ;;  %1102 = vmatpush1.bf16.msra.mxu0 %v2824_v12  ;;  %v245_v29 = vrot.slane %v243_v24, 1  ;;  %v1002_v31 = vshrl.u32 %v2857_v27, 16  ;;  %v1005_v32 = vshll.u32 %v2857_v27, 16  ;;  %v2593_v36 = vld [vmem:[#allocation2 + $0x144] ss:$8 sps:$4 sm:$0xff]   ;;  %v2870_v48 = vld [vmem:[%s2829_s6 + $0x14] sm:$0xff]  }
  0x36   : > { %341 = vmatprep.subr.bf16.mxu1 %v2578_v13  ;;  %1103 = vmatprep.subr.bf16.mxu0 %v2833_v14  ;;  %v994_v34 = vshrl.u32 %v2266_v28, 16  ;;  %v997_v35 = vshll.u32 %v2266_v28, 16  ;;  %v2591_v44 = vld [vmem:[#allocation2 + $0x140] ss:$8 sps:$4 sm:$0xff]   ;;  %v2596_v50 = vld [vmem:[#allocation2 + $0x154] ss:$8 sps:$4 sm:$0xff]   ;;  %v254_v51 = vor.u32 %v252_v41, %v250_v30 }
  0x37   : > { %v246_v37 = vor.u32 %v245_v29, %v241_v23  ;;  %v1004_v38 = vrot.slane %v1002_v31, 1  ;;  %v1007_v39 = vrot.slane %v1005_v32, 2  ;;  %v258_v52 = vrot.slane %v256_v47, 1  ;;  %v2602_v56 = vld [vmem:[#allocation2 + $0x10] ss:$8 sps:$4 sm:$0xff]   ;;  %s2537_s9 = smul.u32 80, %s3235_s13 }
  0x38   : > { %v996_v42 = vrot.slane %v994_v34, 1  ;;  %v999_v43 = vrot.slane %v997_v35, 2  ;;  %v1011_v53 = vshrl.u32 %v2870_v48, 16  ;;  %v1014_v54 = vshll.u32 %v2870_v48, 16  ;;  %v2604_v59 = vld [vmem:[#allocation2 + $0x14] ss:$8 sps:$4 sm:$0xff]  }
  0x39   : > { %342 = vmatpush1.bf16.msra.mxu1 %v2582_v15  ;;  %1104 = vmatpush1.bf16.msra.mxu0 %v2835_v16  ;;  %v251_v45 = vsel %vm239_vm0, %v246_v37, %v250_v30  ;;  %v1008_v46 = vor.u32 %v1007_v39, %v1004_v38  ;;  %v2594_v60 = vld [vmem:[#allocation2 + $0x150] ss:$8 sps:$4 sm:$0xff]   ;;  %v2601_v61 = vld [vmem:[#allocation2 + $0x164] ss:$8 sps:$4 sm:$0xff]   ;;  %v259_v62 = vsel %vm239_vm0, %v254_v51, %v258_v52  ;;  %v260_v3 = vshrl.u32 %v2864_v40, 16  ;;  %s3192_s14 = scalar_lea.vmem %s3226_s3, %s2537_s9 }
  0x3a   : > { %472 = vmatprep.subr.bf16.mxu1 %v2588_v21  ;;  %1279 = vmatprep.subr.bf16.mxu0 %v2593_v36  ;;  %v1000_v49 = vor.u32 %v999_v43, %v996_v42  ;;  %v1013_v57 = vrot.slane %v1011_v53, 1  ;;  %v1016_v58 = vrot.slane %v1014_v54, 2  ;;  %v2883_v1 = vld [vmem:[%s2829_s6 + $0x18] sm:$0xff]   ;;  %v1200_v5 = vld [vmem:[%s2829_s6 + $0x4] sm:$0xc]  ;;  %v569_v11 = vrot.slane %v2846_v20, 1 }
  0x3b   : > { %v2599_v7 = vld [vmem:[#allocation2 + $0x160] ss:$8 sps:$4 sm:$0xff]   ;;  %v571_v13 = vrot.slane %v2864_v40, 1  ;;  %v264_v15 = vshll.u32 %v2883_v1, 16  ;;  %v2612_v17 = vld [vmem:[#allocation2 + $0x24] ss:$8 sps:$4 sm:$0xff]   ;;  %v2285_v23 = vcombine.low %v1200_v5, %v2854_v26  ;;  %v262_v30 = vor.u32 %v260_v3, %v258_v52 }
  0x3c   : > { %2215 = vmatmul.mubr.msk.bf16.vlgmr.msra.gmra.mrb[0].mxu1 %vm319_vm2, %v251_v45  ;;  %v1009_v55 = vsel %vm992_vm1, %v1000_v49, %v1008_v46  ;;  %v2880_v63 = vor.u32 %v1016_v58, %v1013_v57  ;;  %v2610_v9 = vld [vmem:[#allocation2 + $0x20] ss:$8 sps:$4 sm:$0xff]   ;;  %v205_v24 = vld [vmem:[%s2829_s6 + $0x24] sm:$0xf]  ;;  %v573_v28 = vrot.slane %v2883_v1, 1  ;;  %v1216_v51 = vrot.slane %v2870_v48, 2 }
  0x3d   : > { %473 = vmatpush1.bf16.msra.mxu1 %v2586_v33  ;;  %377 = vmatprep.mubr.bf16.mxu1 %v2738_v0  ;;  %v2891_v21 = vld [vmem:[%s2829_s6 + $0x20] sm:$0xf]  ;;  %v2901_v25 = vsel %vm567_vm3, %v569_v11, %v571_v13  ;;  %v2607_v29 = vld [vmem:[#allocation2 + $0x174] ss:$8 sps:$4 sm:$0xff]   ;;  %v266_v31 = vrot.slane %v264_v15, 1  ;;  %v1214_v33 = vrot.slane %v2857_v27, 2 }
  0x3e   : > { %2280 = vmatmul.mubr.msk.bf16.vlgmr.msra.gmra.mrb[0].mxu0 %vm319_vm2, %v1009_v55  ;;  %474 = vmatprep.subr.bf16.mxu1 %v2604_v59  ;;  %v1018_v22 = vsel %vm992_vm1, %v1008_v46, %v2880_v63  ;;  %v2906_v32 = vcombine.low %v2891_v21, %v205_v24  ;;  %v2619_v26 = vld [vmem:[#allocation2 + $0x34] ss:$8 sps:$4 sm:$0xff]   ;;  %v2910_v34 = vsel %vm567_vm3, %v571_v13, %v573_v28  ;;  %v2617_v35 = vld [vmem:[#allocation2 + $0x30] ss:$8 sps:$4 sm:$0xff]   ;;  %v1213_v37 = vrot.slane %v2285_v23, 2  ;;  %v2941_v3 = vld [vmem:[%s2829_s6 + $0x20] sm:$0xff]  }
  0x3f   : > { %1280 = vmatpush1.bf16.msra.mxu0 %v2591_v44  ;;  %1139 = vmatprep.mubr.bf16.mxu0 %v2738_v0  ;;  %v2605_v36 = vld [vmem:[#allocation2 + $0x170] ss:$8 sps:$4 sm:$0xff]   ;;  %v267_v39 = vsel %vm239_vm0, %v262_v30, %v266_v31  ;;  %v268_v27 = vshrl.u32 %v2883_v1, 16  ;;  %v2616_v42 = vld [vmem:[#allocation2 + $0x184] ss:$8 sps:$4 sm:$0xff]   ;;  %v2931_v55 = vld [vmem:[%s2829_s6 + $0x1c] sm:$0xff]  }
  0x40   : > { %1281 = vmatprep.subr.bf16.mxu0 %v2596_v50  ;;  %v575_v38 = vrot.slane %v2906_v32, 1  ;;  %v272_v41 = vshll.u32 %v2906_v32, 16  ;;  %v2626_v43 = vld [vmem:[#allocation2 + $0x84] ss:$8 sps:$4 sm:$0xff]   ;;  %v1215_v45 = vsel %vm1212_vm4, %v1213_v37, %v1214_v33  ;;  %v2614_v46 = vld [vmem:[#allocation2 + $0x180] ss:$8 sps:$4 sm:$0xff]  }
  0x41   : > { %475 = vmatpush1.bf16.msra.mxu1 %v2602_v56  ;;  %v270_v47 = vor.u32 %v268_v27, %v266_v31  ;;  %v2623_v50 = vld [vmem:[#allocation2 + $0x194] ss:$8 sps:$4 sm:$0xff]   ;;  %v2621_v52 = vld [vmem:[#allocation2 + $0x190] ss:$8 sps:$4 sm:$0xff]   ;;  %v2630_v54 = vld [vmem:[#allocation2 + $0x1a4] ss:$8 sps:$4 sm:$0xff]   ;;  %v1217_v56 = vsel %vm1212_vm4, %v1214_v33, %v1216_v51 }
  0x42   : > { %476 = vmatprep.subr.bf16.mxu1 %v2612_v17  ;;  %v2921_v44 = vsel %vm567_vm3, %v573_v28, %v575_v38  ;;  %v274_v49 = vrot.slane %v272_v41, 1  ;;  %v276_v57 = vshrl.u32 %v2906_v32, 16  ;;  %v2628_v58 = vld [vmem:[#allocation2 + $0x1a0] ss:$8 sps:$4 sm:$0xff]   ;;  %v2637_v48 = vld [vmem:[#allocation2 + $0x1b4] ss:$8 sps:$4 sm:$0xff]  }
  0x43   : > { %1282 = vmatpush1.bf16.msra.mxu0 %v2594_v60  ;;  %v1218_v60 = vrot.slane %v2931_v55, 2  ;;  %v555_v5 = vld [vmem:[%s2829_s6] sm:$0xe]  ;;  %v2951_v15 = vld [vmem:[%s2829_s6 + $0x28] sm:$0xff]   ;;  %v1434_v17 = vrot.slane %v2941_v3, 2  ;;  %v2981_v37 = vld [vmem:[%s2829_s6 + $0x10] sm:$0xff]  }
  0x44   : > { %2216 = vmatmul.mubr.msk.bf16.gmra.mrb[4].mxu1 %vm319_vm2, %v259_v62  ;;  %1283 = vmatprep.subr.bf16.mxu0 %v2601_v61  ;;  %v275_v53 = vsel %vm239_vm0, %v270_v47, %v274_v49  ;;  %v278_v59 = vor.u32 %v276_v57, %v274_v49  ;;  %v2635_v61 = vld [vmem:[#allocation2 + $0x1b0] ss:$8 sps:$4 sm:$0xff]   ;;  %v2646_v62 = vld [vmem:[#allocation2 + $0x1c4] ss:$8 sps:$4 sm:$0xff]   ;;  %v1436_v23 = vrot.slane %v2951_v15, 2  ;;  %vm1834_vm5 = vcmask 1044480  }
  0x45   : > { %387 = vmatprep.mubr.bf16.mxu1 %v2738_v0  ;;  %477 = vmatpush1.bf16.msra.mxu1 %v2610_v9  ;;  %v2234_v9 = vcombine.low %v555_v5, %v2839_v18  ;;  %v1219_v13 = vsel %vm1212_vm4, %v1216_v51, %v1218_v60  ;;  %v2663_v24 = vld [vmem:[%s2829_s6 + $0x30] ss:$0 sps:$4 sm:$0x11]   ;;  %v2624_v31 = vld [vmem:[#allocation2 + $0x80] ss:$8 sps:$4 sm:$0xff]   ;;  %v1840_v47 = vrot.slane %v2941_v3, 3 }
  0x46   : > { %2281 = vmatmul.mubr.msk.bf16.gmra.mrb[4].mxu0 %vm319_vm2, %v1018_v22  ;;  %478 = vmatprep.subr.bf16.mxu1 %v2619_v26  ;;  %v1438_v30 = vrot.slane %v2663_v24, 2  ;;  %v2971_v33 = vld [vmem:[%s2829_s6 + $0x2c] ss:$0 sps:$4 sm:$0x11]   ;;  %v2634_v26 = vld [vmem:[#allocation2 + $0x94] ss:$8 sps:$4 sm:$0xff]  }
  0x47   : > { %1284 = vmatpush1.bf16.msra.mxu0 %v2599_v7  ;;  %1311 = vmatprep.mubr.bf16.mxu0 %v2738_v0  ;;  %v2945_v7 = vld [vmem:[%s2829_s6 + $0x24] sm:$0xff]   ;;  %v568_v22 = vrot.slane %v2234_v9, 1  ;;  %v2649_v49 = vld [vmem:[#allocation2 + $0xb4] ss:$8 sps:$4 sm:$0xff]   ;;  %v1020_v51 = vshrl.u32 %v2931_v55, 16 }
  0x48   : > { %1285 = vmatprep.subr.bf16.mxu0 %v2607_v29  ;;  %v1220_v28 = vrot.slane %v2945_v7, 2  ;;  %v2968_v29 = vsel %vm1212_vm4, %v1434_v17, %v1436_v23  ;;  %v1382_v27 = vld [vmem:[%s2829_s6 + $0x8] sm:$0xc]  ;;  %v2642_v41 = vld [vmem:[#allocation2 + $0xa4] ss:$8 sps:$4 sm:$0xff]   ;;  %v1029_v24 = vshrl.u32 %v2945_v7, 16 }
  0x49   : > { %479 = vmatpush1.bf16.msra.mxu1 %v2617_v35  ;;  %v2961_v18 = vsel %vm567_vm3, %v568_v22, %v569_v11  ;;  %v2974_v11 = vsel %vm1212_vm4, %v1436_v23, %v1438_v30  ;;  %v2647_v57 = vld [vmem:[#allocation2 + $0xb0] ss:$8 sps:$4 sm:$0xff]   ;;  %v1842_v23 = vrot.slane %v2951_v15, 3  ;;  %vm1610_vm6 = vsmask.f32 5376 }
  0x4a   : > { %632 = vmatprep.subr.bf16.mxu1 %v2626_v43  ;;  %v1221_v35 = vsel %vm1212_vm4, %v1218_v60, %v1220_v28  ;;  %v1836_v43 = vrot.slane %v2981_v37, 3  ;;  %v1022_v60 = vrot.slane %v1020_v51, 1 }
  0x4b   : > { %1286 = vmatpush1.bf16.msra.mxu0 %v2605_v36  ;;  %v2632_v36 = vld [vmem:[#allocation2 + $0x90] ss:$8 sps:$4 sm:$0xff]  }
  0x4c   : > { %2217 = vmatmul.mubr.msk.bf16.gmra.mrb[8].mxu1 %vm319_vm2, %v267_v39  ;;  %1495 = vmatprep.subr.bf16.mxu0 %v2616_v42  ;;  %v1222_v39 = vrot.slane %v2971_v33, 2  ;;  %v2986_v42 = vld [vmem:[%s2829_s6 + $0x18] sm:$0xff]  }
  0x4d   : > { %397 = vmatprep.mubr.bf16.mxu1 %v2738_v0 }
  0x4e   : > { %2294 = vmatmul.mubr.msk.bf16.vlgmr.msra.gmra.mrb[0].mxu0 %vm319_vm2, %v1215_v45  ;;  %v1838_v45 = vrot.slane %v2986_v42, 3 }
  0x4f   : > { %1321 = vmatprep.mubr.bf16.mxu0 %v2738_v0  ;;  %1496 = vmatpush1.bf16.msra.mxu0 %v2614_v46  ;;  %v2640_v46 = vld [vmem:[#allocation2 + $0xa0] ss:$8 sps:$4 sm:$0xff]  }
  0x50   : > { %1497 = vmatprep.subr.bf16.mxu0 %v2623_v50  ;;  %v2995_v50 = vsel %vm1834_vm5, %v1836_v43, %v1838_v45 }
  0x53   : > { %1498 = vmatpush1.bf16.msra.mxu0 %v2621_v52 }
  0x54   : > { %2218 = vmatmul.mubr.msk.bf16.gmra.mrb[12].mxu1 %vm319_vm2, %v275_v53  ;;  %1499 = vmatprep.subr.bf16.mxu0 %v2630_v54  ;;  %v3001_v53 = vsel %vm1834_vm5, %v1838_v45, %v1840_v47  ;;  %v1223_v54 = vsel %vm1212_vm4, %v1220_v28, %v1222_v39 }
  0x55   : > { %407 = vmatprep.mubr.bf16.mxu1 %v2738_v0 }
  0x56   : > { %2295 = vmatmul.mubr.msk.bf16.gmra.mrb[4].mxu0 %vm319_vm2, %v1217_v56  ;;  %v1023_v56 = vshll.u32 %v2931_v55, 16  ;;  %v3020_v55 = vld [vmem:[%s2829_s6 + $0x30] ss:$0 sps:$4 sm:$0x33]  }
  0x57   : > { %1331 = vmatprep.mubr.bf16.mxu0 %v2738_v0  ;;  %1500 = vmatpush1.bf16.msra.mxu0 %v2628_v58  ;;  %v2658_v58 = vld [vmem:[#allocation2 + $0xc4] ss:$8 sps:$4 sm:$0xff]   ;;  %v1844_v39 = vrot.slane %v3020_v55, 3  ;;  %v1659_v32 = vshll.u32 %v3020_v55, 16 }
  0x58   : > { %1501 = vmatprep.subr.bf16.mxu0 %v2637_v48  ;;  %v3009_v48 = vld [vmem:[%s2829_s6 + $0x1c] sm:$0xff]   ;;  %v1025_v9 = vrot.slane %v1023_v56, 2  ;;  %v2662_v56 = vld [vmem:[#allocation2 + $0x1e4] ss:$8 sps:$4 sm:$0xff]  }
  0x5a   : > { %v1026_v30 = vor.u32 %v1025_v9, %v1022_v60  ;;  %v196_v60 = vld [vmem:[%s2829_s6 + $0x24] sm:$0x7] }
  0x5b   : > { %1502 = vmatpush1.bf16.msra.mxu0 %v2635_v61  ;;  %v1822_v61 = vld [vmem:[%s2829_s6 + $0x8] sm:$0x8]  ;;  %v2675_v9 = vld [vmem:[#allocation2 + $0x204] ss:$8 sps:$4 sm:$0xff]  }
  0x5c   : > { %2219 = vmatmul.mubr.msk.bf16.gmra.mrb[16].mxu1 %vm319_vm2, %v278_v59  ;;  %1719 = vmatprep.subr.bf16.mxu0 %v2646_v62  ;;  %v1430_v59 = vrot.slane %v2981_v37, 2  ;;  %v3016_v62 = vld [vmem:[%s2829_s6 + $0x24] sm:$0xff]  }
  0x5d   : > { %504 = vmatprep.mubr.bf16.mxu1 %v2738_v0  ;;  %v785_v22 = vrot.slane %v3016_v62, 1 }
  0x5e   : > { %2296 = vmatmul.mubr.msk.bf16.gmra.mrb[8].mxu0 %vm319_vm2, %v1219_v13  ;;  %v783_v13 = vrot.slane %v3009_v48, 1 }
  0x5f   : > { %1341 = vmatprep.mubr.bf16.mxu0 %v2738_v0 }
  0x64   : > { %2229 = vmatmul.mubr.msk.bf16.vlgmr.msra.gmra.mrb[0].mxu1 %vm319_vm2, %v2843_v19  ;;  %v1383_v19 = vld [vmem:[%s2829_s6 + $0xc] sm:$0xf] }
  0x65   : > { %633 = vmatpush1.bf16.msra.mxu1 %v2624_v31  ;;  %514 = vmatprep.mubr.bf16.mxu1 %v2738_v0  ;;  %v2998_v52 = vcombine.low %v1382_v27, %v1383_v19  ;;  %v2332_v5 = vcombine.low %v1822_v61, %v1383_v19  ;;  %v1032_v31 = vshll.u32 %v2945_v7, 16  ;;  %v3046_v19 = vsel %vm992_vm1, %v2880_v63, %v1026_v30  ;;  %v2652_v63 = vld [vmem:[#allocation2 + $0x1d0] ss:$8 sps:$4 sm:$0xff]  }
  0x66   : > { %634 = vmatprep.subr.bf16.mxu1 %v2634_v26  ;;  %2297 = vmatmul.mubr.msk.bf16.gmra.mrb[12].mxu0 %vm319_vm2, %v1221_v35  ;;  %v3032_v26 = vsel %vm567_vm3, %v783_v13, %v785_v22  ;;  %v3035_v35 = vsel %vm1834_vm5, %v1840_v47, %v1842_v23  ;;  %v3050_v47 = vsel %vm1834_vm5, %v1842_v23, %v1844_v39  ;;  %v2664_v23 = vld [vmem:[#allocation2 + $0xd0] ss:$8 sps:$4 sm:$0xff]  }
  0x67   : > { %1351 = vmatprep.mubr.bf16.mxu0 %v2738_v0  ;;  %v1835_v28 = vrot.slane %v2332_v5, 3  ;;  %v1034_v45 = vrot.slane %v1032_v31, 2  ;;  %v2220_v61 = vcombine.low %v2891_v21, %v196_v60  ;;  %v2667_v5 = vld [vmem:[#allocation2 + $0x1f0] ss:$8 sps:$4 sm:$0xff]   ;;  %v2666_v21 = vld [vmem:[#allocation2 + $0xd4] ss:$8 sps:$4 sm:$0xff]  }
  0x68   : > { %v1623_v31 = vshll.u32 %v2981_v37, 16 }
  0x69   : > { %635 = vmatpush1.bf16.msra.mxu1 %v2632_v36  ;;  %v1031_v36 = vrot.slane %v1029_v24, 1  ;;  %v3042_v7 = vsel %vm1834_vm5, %v1835_v28, %v1836_v43  ;;  %v1432_v43 = vrot.slane %v2986_v42, 2  ;;  %v2672_v24 = vld [vmem:[#allocation2 + $0xe4] ss:$8 sps:$4 sm:$0xff]   ;;  %v1615_v28 = vshll.u32 %v2998_v52, 16 }
  0x6a   : > { %636 = vmatprep.subr.bf16.mxu1 %v2642_v41  ;;  %v2644_v41 = vld [vmem:[#allocation2 + $0x1c0] ss:$8 sps:$4 sm:$0xff]  }
  0x6c   : > { %2230 = vmatmul.mubr.msk.bf16.gmra.mrb[4].mxu1 %vm319_vm2, %v2846_v20  ;;  %v1429_v20 = vrot.slane %v2998_v52, 2 }
  0x6d   : > { %524 = vmatprep.mubr.bf16.mxu1 %v2738_v0  ;;  %637 = vmatpush1.bf16.msra.mxu1 %v2640_v46  ;;  %v2654_v46 = vld [vmem:[#allocation2 + $0x1d4] ss:$8 sps:$4 sm:$0xff]  }
  0x6e   : > { %638 = vmatprep.subr.bf16.mxu1 %v2649_v49  ;;  %2298 = vmatmul.mubr.msk.bf16.gmra.mrb[16].mxu0 %vm319_vm2, %v1223_v54  ;;  %v1431_v27 = vsel %vm1212_vm4, %v1429_v20, %v1430_v59  ;;  %v1038_v49 = vshll.u32 %v2971_v33, 16  ;;  %v1433_v33 = vsel %vm1212_vm4, %v1430_v59, %v1432_v43  ;;  %v2669_v20 = vld [vmem:[#allocation2 + $0x1f4] ss:$8 sps:$4 sm:$0xff]   ;;  %v2656_v59 = vld [vmem:[#allocation2 + $0xc0] ss:$8 sps:$4 sm:$0xff]  }
  0x6f   : > { %1527 = vmatprep.mubr.bf16.mxu0 %v2738_v0 }
  0x70   : > { %v1040_v51 = vrot.slane %v1038_v49, 2 }
  0x71   : > { %639 = vmatpush1.bf16.msra.mxu1 %v2647_v57 }
  0x72   : > { %842 = vmatprep.subr.bf16.mxu1 %v2658_v58  ;;  %v2660_v58 = vld [vmem:[#allocation2 + $0x1e0] ss:$8 sps:$4 sm:$0xff]  }
  0x74   : > { %2231 = vmatmul.mubr.msk.bf16.gmra.mrb[8].mxu1 %vm319_vm2, %v2864_v40  ;;  %v1035_v40 = vor.u32 %v1034_v45, %v1031_v36  ;;  %v2678_v36 = vld [vmem:[#allocation2 + $0xf4] ss:$8 sps:$4 sm:$0xff]   ;;  %v2676_v45 = vld [vmem:[#allocation2 + $0xf0] ss:$8 sps:$4 sm:$0xff]  }
  0x75   : > { %534 = vmatprep.mubr.bf16.mxu1 %v2738_v0 }
  0x76   : > { %2313 = vmatmul.mubr.msk.bf16.vlgmr.msra.gmra.mrb[0].mxu0 %vm319_vm2, %v1431_v27  ;;  %v3057_v54 = vsel %vm992_vm1, %v1026_v30, %v1035_v40  ;;  %v3060_v57 = vsel %vm992_vm1, %v1035_v40, %v1040_v51  ;;  %v1620_v30 = vshrl.u32 %v2981_v37, 16  ;;  %v1617_v27 = vrot.slane %v1615_v28, 3 }
  0x77   : > { %1537 = vmatprep.mubr.bf16.mxu0 %v2738_v0  ;;  %1720 = vmatpush1.bf16.msra.mxu0 %v2644_v41  ;;  %v1625_v41 = vrot.slane %v1623_v31, 3  ;;  %v2687_v31 = vld [vmem:[%s2829_s6 + $0x14] sm:$0xff]  }
  0x78   : > { %1721 = vmatprep.subr.bf16.mxu0 %v2654_v46  ;;  %v1629_v46 = vshrl.u32 %v2986_v42, 16 }
  0x7a   : > { %v1631_v40 = vrot.slane %v1629_v46, 2 }
  0x7b   : > { %1722 = vmatpush1.bf16.msra.mxu0 %v2652_v63  ;;  %v1638_v63 = vshrl.u32 %v2941_v3, 16 }
  0x7c   : > { %2232 = vmatmul.mubr.msk.bf16.gmra.mrb[12].mxu1 %vm319_vm2, %v2883_v1  ;;  %1723 = vmatprep.subr.bf16.mxu0 %v2662_v56  ;;  %v1435_v1 = vsel %vm1212_vm4, %v1432_v43, %v1434_v17  ;;  %v1612_v17 = vshrl.u32 %v2998_v52, 16  ;;  %v2681_v43 = vld [vmem:[#allocation2 + $0x214] ss:$8 sps:$4 sm:$0xff]   ;;  %v2679_v56 = vld [vmem:[#allocation2 + $0x210] ss:$8 sps:$4 sm:$0xff]  }
  0x7d   : > { %544 = vmatprep.mubr.bf16.mxu1 %v2738_v0 }
  0x7e   : > { %2314 = vmatmul.mubr.msk.bf16.gmra.mrb[4].mxu0 %vm319_vm2, %v1433_v33  ;;  %v1614_v39 = vrot.slane %v1612_v17, 2 }
  0x7f   : > { %1547 = vmatprep.mubr.bf16.mxu0 %v2738_v0  ;;  %1724 = vmatpush1.bf16.msra.mxu0 %v2660_v58  ;;  %v1640_v58 = vrot.slane %v1638_v63, 2 }
  0x80   : > { %1725 = vmatprep.subr.bf16.mxu0 %v2669_v20  ;;  %v1618_v37 = vor.u32 %v1617_v27, %v1614_v39  ;;  %v2684_v20 = vld [vmem:[#allocation2 + $0x220] ss:$8 sps:$4 sm:$0xff]   ;;  %v1661_v39 = vrot.slane %v1659_v32, 3  ;;  %v781_v27 = vrot.slane %v2687_v31, 1 }
  0x83   : > { %1726 = vmatpush1.bf16.msra.mxu0 %v2667_v5  ;;  %v1647_v5 = vshrl.u32 %v2951_v15, 16 }
  0x84   : > { %2233 = vmatmul.mubr.msk.bf16.gmra.mrb[16].mxu1 %vm319_vm2, %v2220_v61  ;;  %1901 = vmatprep.subr.bf16.mxu0 %v2675_v9  ;;  %v2691_v61 = vld [vmem:[#allocation2 + $0x234] ss:$8 sps:$4 sm:$0xff]   ;;  %v2689_v9 = vld [vmem:[#allocation2 + $0x230] ss:$8 sps:$4 sm:$0xff]  }
  0x85   : > { %664 = vmatprep.mubr.bf16.mxu1 %v2738_v0 }
  0x86   : > { %2315 = vmatmul.mubr.msk.bf16.gmra.mrb[8].mxu0 %vm319_vm2, %v1435_v1  ;;  %v2682_v1 = vld [vmem:[%s2829_s6 + $0x4] sm:$0xfe]  }
  0x87   : > { %1557 = vmatprep.mubr.bf16.mxu0 %v2738_v0  ;;  %v778_v17 = vrot.slane %v2682_v1, 1 }
  0x8c   : > { %2243 = vmatmul.mubr.msk.bf16.vlgmr.msra.gmra.mrb[0].mxu1 %vm319_vm2, %v2961_v18  ;;  %v2670_v18 = vld [vmem:[#allocation2 + $0xe0] ss:$8 sps:$4 sm:$0xff]  }
  0x8d   : > { %843 = vmatpush1.bf16.msra.mxu1 %v2656_v59  ;;  %674 = vmatprep.mubr.bf16.mxu1 %v2738_v0  ;;  %v2683_v59 = vld [vmem:[%s2829_s6 + $0xc] sm:$0xff]  }
  0x8e   : > { %844 = vmatprep.subr.bf16.mxu1 %v2666_v21  ;;  %2316 = vmatmul.mubr.msk.bf16.gmra.mrb[12].mxu0 %vm319_vm2, %v2968_v29  ;;  %v1622_v29 = vrot.slane %v1620_v30, 2  ;;  %v779_v28 = vrot.slane %v2683_v59, 1  ;;  %v1656_v30 = vshrl.u32 %v3020_v55, 16 }
  0x8f   : > { %1567 = vmatprep.mubr.bf16.mxu0 %v2738_v0 }
  0x90   : > { %v1626_v52 = vor.u32 %v1625_v41, %v1622_v29  ;;  %v782_v29 = vsel %vm567_vm3, %v779_v28, %v781_v27 }
  0x91   : > { %845 = vmatpush1.bf16.msra.mxu1 %v2664_v23  ;;  %v1649_v23 = vrot.slane %v1647_v5, 2 }
  0x92   : > { %846 = vmatprep.subr.bf16.mxu1 %v2672_v24  ;;  %v1627_v49 = vsel %vm1610_vm6, %v1618_v37, %v1626_v52 }
  0x94   : > { %2244 = vmatmul.mubr.msk.bf16.gmra.mrb[4].mxu1 %vm319_vm2, %v2901_v25  ;;  %v1632_v25 = vshll.u32 %v2986_v42, 16 }
  0x95   : > { %684 = vmatprep.mubr.bf16.mxu1 %v2738_v0  ;;  %847 = vmatpush1.bf16.msra.mxu1 %v2670_v18 }
  0x96   : > { %848 = vmatprep.subr.bf16.mxu1 %v2678_v36  ;;  %2317 = vmatmul.mubr.msk.bf16.gmra.mrb[16].mxu0 %vm319_vm2, %v2974_v11  ;;  %v1634_v51 = vrot.slane %v1632_v25, 3  ;;  %v2673_v11 = vld [vmem:[#allocation2 + $0x200] ss:$8 sps:$4 sm:$0xff]   ;;  %v1658_v36 = vrot.slane %v1656_v30, 2 }
  0x97   : > { %1751 = vmatprep.mubr.bf16.mxu0 %v2738_v0 }
  0x98   : > { %v1635_v42 = vor.u32 %v1634_v51, %v1631_v40  ;;  %v1662_v55 = vor.u32 %v1661_v39, %v1658_v36 }
  0x99   : > { %849 = vmatpush1.bf16.msra.mxu1 %v2676_v45 }
  0x9a   : > { %2368 = vmatprep.subr.bf16.mxu1 %v2810_v2  ;;  %v1641_v2 = vshll.u32 %v2941_v3, 16  ;;  %v1636_v33 = vsel %vm1610_vm6, %v1626_v52, %v1635_v42 }
  0x9c   : > { %2245 = vmatmul.mubr.msk.bf16.gmra.mrb[8].mxu1 %vm319_vm2, %v2910_v34  ;;  %v2686_v34 = vld [vmem:[#allocation2 + $0x224] ss:$8 sps:$4 sm:$0xff]   ;;  %v1643_v60 = vrot.slane %v1641_v2, 3 }
  0x9d   : > { %694 = vmatprep.mubr.bf16.mxu1 %v2738_v0 }
  0x9e   : > { %2327 = vmatmul.mubr.msk.bf16.vlgmr.msra.gmra.mrb[0].mxu0 %vm319_vm2, %v1627_v49  ;;  %v1644_v3 = vor.u32 %v1643_v60, %v1640_v58 }
  0x9f   : > { %1761 = vmatprep.mubr.bf16.mxu0 %v2738_v0  ;;  %1902 = vmatpush1.bf16.msra.mxu0 %v2673_v11 }
  0xa0   : > { %1903 = vmatprep.subr.bf16.mxu0 %v2681_v43  ;;  %v1645_v21 = vsel %vm1610_vm6, %v1635_v42, %v1644_v3 }
  0xa3   : > { %1904 = vmatpush1.bf16.msra.mxu0 %v2679_v56 }
  0xa4   : > { %2246 = vmatmul.mubr.msk.bf16.gmra.mrb[12].mxu1 %vm319_vm2, %v2921_v44  ;;  %1905 = vmatprep.subr.bf16.mxu0 %v2686_v34  ;;  %v1650_v44 = vshll.u32 %v2951_v15, 16 }
  0xa5   : > { %704 = vmatprep.mubr.bf16.mxu1 %v2738_v0 }
  0xa6   : > { %2328 = vmatmul.mubr.msk.bf16.gmra.mrb[4].mxu0 %vm319_vm2, %v1636_v33  ;;  %v1652_v24 = vrot.slane %v1650_v44, 3 }
  0xa7   : > { %1771 = vmatprep.mubr.bf16.mxu0 %v2738_v0  ;;  %1906 = vmatpush1.bf16.msra.mxu0 %v2684_v20 }
  0xa8   : > { %1907 = vmatprep.subr.bf16.mxu0 %v2691_v61  ;;  %v1653_v15 = vor.u32 %v1652_v24, %v1649_v23 }
  0xaa   : > { %v1654_v18 = vsel %vm1610_vm6, %v1644_v3, %v1653_v15 }
  0xab   : > { %1908 = vmatpush1.bf16.msra.mxu0 %v2689_v9 }
  0xac   : > { %2247 = vmatmul.mubr.msk.bf16.gmra.mrb[16].mxu1 %vm319_vm2, %v575_v38  ;;  %v780_v38 = vsel %vm567_vm3, %v778_v17, %v779_v28 }
  0xad   : > { %874 = vmatprep.mubr.bf16.mxu1 %v2738_v0 }
  0xae   : > { %2329 = vmatmul.mubr.msk.bf16.gmra.mrb[8].mxu0 %vm319_vm2, %v1645_v21 }
  0xaf   : > { %1781 = vmatprep.mubr.bf16.mxu0 %v2738_v0 }
  0xb4   : > { %2261 = vmatmul.mubr.msk.bf16.vlgmr.msra.gmra.mrb[0].mxu1 %vm319_vm2, %v780_v38 }
  0xb5   : > { %2372 = vmatpush1.bf16.msra.mxu1 %v2812_v4  ;;  %884 = vmatprep.mubr.bf16.mxu1 %v2738_v0  ;;  %v1663_v4 = vsel %vm1610_vm6, %v1653_v15, %v1662_v55 }
  0xb6   : > { %2369 = vmatprep.subr.bf16.mxu1 %v2817_v6  ;;  %2330 = vmatmul.mubr.msk.bf16.gmra.mrb[12].mxu0 %vm319_vm2, %v1654_v18  ;;  %v784_v6 = vsel %vm567_vm3, %v781_v27, %v783_v13 }
  0xb7   : > { %1791 = vmatprep.mubr.bf16.mxu0 %v2738_v0 }
  0xb9   : > { %2373 = vmatpush1.bf16.msra.mxu1 %v2819_v8 }
  0xba   : > { %2370 = vmatprep.subr.bf16.mxu1 %v2822_v10 }
  0xbc   : > { %2262 = vmatmul.mubr.msk.bf16.gmra.mrb[4].mxu1 %vm319_vm2, %v782_v29 }
  0xbd   : > { %894 = vmatprep.mubr.bf16.mxu1 %v2738_v0  ;;  %2374 = vmatpush1.bf16.msra.mxu1 %v2824_v12 }
  0xbe   : > { %2371 = vmatprep.subr.bf16.mxu1 %v2833_v14  ;;  %2331 = vmatmul.mubr.msk.bf16.gmra.mrb[16].mxu0 %vm319_vm2, %v1663_v4 }
  0xbf   : > { %1933 = vmatprep.mubr.bf16.mxu0 %v2738_v0 }
  0xc1   : > { %2375 = vmatpush1.bf16.msra.mxu1 %v2835_v16  ;;  %v2006_v16 = vlaneseq }
  0xc3   : > { %v2007_v62 = vshrl.u32 %v2006_v16, 7 }
  0xc4   : > { %2263 = vmatmul.mubr.msk.bf16.gmra.mrb[8].mxu1 %vm319_vm2, %v784_v6 }
  0xc5   : > { %904 = vmatprep.mubr.bf16.mxu1 %v2738_v0 }
  0xc6   : > { %2341 = vmatmul.mubr.msk.bf16.vlgmr.msra.gmra.mrb[0].mxu0 %vm319_vm2, %v3042_v7 }
  0xc7   : > { %1943 = vmatprep.mubr.bf16.mxu0 %v2738_v0 }
  0xcc   : > { %2264 = vmatmul.mubr.msk.bf16.gmra.mrb[12].mxu1 %vm319_vm2, %v3032_v26  ;;  %v2012_v26 = vsub.s32 1, %v2007_v62 }
  0xcd   : > { %914 = vmatprep.mubr.bf16.mxu1 %v2738_v0 }
  0xce   : > { %2342 = vmatmul.mubr.msk.bf16.gmra.mrb[4].mxu0 %vm319_vm2, %v2995_v50 }
  0xcf   : > { %1953 = vmatprep.mubr.bf16.mxu0 %v2738_v0 }
  0xd4   : > { %2265 = vmatmul.mubr.msk.bf16.gmra.mrb[16].mxu1 %vm319_vm2, %v785_v22  ;;  %v2008_v22 = vsub.s32 0, %v2007_v62 }
  0xd5   : > { %1149 = vmatprep.mubr.bf16.mxu1 %v2738_v0 }
  0xd6   : > { %2343 = vmatmul.mubr.msk.bf16.gmra.mrb[8].mxu0 %vm319_vm2, %v3001_v53 }
  0xd7   : > { %1963 = vmatprep.mubr.bf16.mxu0 %v2738_v0 }
  0xdc   : > { %2282 = vmatmul.mubr.msk.bf16.vlgmr.msra.gmra.mrb[8].mxu1 %vm319_vm2, %v3046_v19 }
  0xdd   : > { %1159 = vmatprep.mubr.bf16.mxu1 %v2738_v0 }
  0xde   : > { %2344 = vmatmul.mubr.msk.bf16.gmra.mrb[12].mxu0 %vm319_vm2, %v3035_v35 }
  0xdf   : > { %1973 = vmatprep.mubr.bf16.mxu0 %v2738_v0 }
  0xe4   : > { %2283 = vmatmul.mubr.msk.bf16.gmra.mrb[12].mxu1 %vm319_vm2, %v3057_v54 }
  0xe5   : > { %1169 = vmatprep.mubr.bf16.mxu1 %v2738_v0  ;;  %v2004_v0 = vld [vmem:[%s3225_s2] sm:$0x3] }
  0xe6   : > { %2345 = vmatmul.mubr.msk.bf16.gmra.mrb[16].mxu0 %vm319_vm2, %v3050_v47  ;;  %v3180_v35 = vrot.slane %v2004_v0, %v2008_v22  ;;  %v3182_v19 = vrot.slane %v2004_v0, %v2012_v26 }
  0xec   : > { %2284 = vmatmul.mubr.msk.bf16.gmra.mrb[16].mxu1 %vm319_vm2, %v3060_v57 }
 0x187   : > { %v876_v8 = vpop.f32.mrb[0].mxu1 }
 0x188   : > { %v878_v10 = vpop.f32.mrb[1].mxu1 }
 0x189   : > { %v880_v12 = vpop.f32.mrb[2].mxu1 }
 0x18a   : > { %v882_v14 = vpop.f32.mrb[3].mxu1 }
 0x18f   : > { %v886_v50 = vpop.f32.mrb[4].mxu1 }
 0x190   : > { %v888_v53 = vpop.f32.mrb[5].mxu1 }
 0x191   : > { %v890_v48 = vpop.f32.mrb[6].mxu1 }
 0x192   : > { %v892_v13 = vpop.f32.mrb[7].mxu1 }
 0x199   : > { %v1935_v7 = vpop.f32.mrb[0].mxu0 }
 0x19a   : > { %v2376_v47 = vadd.f32 %v1935_v7, %v876_v8  ;;  %v1937_v54 = vpop.f32.mrb[1].mxu0 }
 0x19b   : > { %v2377_v57 = vadd.f32 %v1937_v54, %v878_v10  ;;  %v1939_v41 = vpop.f32.mrb[2].mxu0 }
 0x19c   : > { %v2016_v45 = vadd.f32 %v2376_v47, %v3180_v35  ;;  %v2378_v37 = vadd.f32 %v1939_v41, %v880_v12  ;;  %v1941_v52 = vpop.f32.mrb[3].mxu0 }
 0x19d   : > { %v2017_v46 = vadd.f32 %v2377_v57, %v3182_v19  ;;  %v2379_v25 = vadd.f32 %v1941_v52, %v882_v14 }
 0x19e   : > { %v2036_v49 = vmax.f32 %v2016_v45, 0.0  ;;  %v2018_v40 = vadd.f32 %v2378_v37, %v3180_v35 }
 0x19f   : > { %v2037_v51 = vmax.f32 %v2017_v46, 0.0  ;;  %v2019_v11 = vadd.f32 %v2379_v25, %v3182_v19 }
 0x1a0   : > { %v2038_v43 = vmax.f32 %v2018_v40, 0.0 }
 0x1a1   : > { %v2358_v42 = vpack.c.bf16 %v2037_v51, %v2036_v49  ;;  %v2039_v63 = vmax.f32 %v2019_v11, 0.0  ;;  %v1945_v2 = vpop.f32.mrb[4].mxu0 }
 0x1a2   : > { %v2380_v56 = vadd.f32 %v1945_v2, %v886_v50  ;;  %v1947_v34 = vpop.f32.mrb[5].mxu0 }
 0x1a3   : > { %2116 = vst [vmem:[%s3192_s14] sm:$0xff] %v2358_v42  ;;  %v2359_v33 = vpack.c.bf16 %v2039_v63, %v2038_v43  ;;  %v2381_v58 = vadd.f32 %v1947_v34, %v888_v53  ;;  %v1949_v60 = vpop.f32.mrb[6].mxu0 }
 0x1a4   : > { %v2020_v20 = vadd.f32 %v2380_v56, %v3180_v35  ;;  %v2382_v61 = vadd.f32 %v1949_v60, %v890_v48  ;;  %v1951_v3 = vpop.f32.mrb[7].mxu0 }
 0x1a5   : > { %2117 = vst [vmem:[%s3192_s14 + $0x8] sm:$0xff] %v2359_v33  ;;  %v2021_v5 = vadd.f32 %v2381_v58, %v3182_v19  ;;  %v2383_v44 = vadd.f32 %v1951_v3, %v892_v13 }
 0x1a6   : > { %v2040_v9 = vmax.f32 %v2020_v20, 0.0  ;;  %v2022_v1 = vadd.f32 %v2382_v61, %v3180_v35 }
 0x1a7   : > { %v2041_v59 = vmax.f32 %v2021_v5, 0.0  ;;  %v2023_v21 = vadd.f32 %v2383_v44, %v3182_v19 }
 0x1a8   : > { %v2042_v23 = vmax.f32 %v2022_v1, 0.0 }
 0x1a9   : > { %v2360_v24 = vpack.c.bf16 %v2041_v59, %v2040_v9  ;;  %v2043_v17 = vmax.f32 %v2023_v21, 0.0  ;;  %v1955_v28 = vpop.f32.mrb[8].mxu0 }
 0x1aa   : > { %v1957_v15 = vpop.f32.mrb[9].mxu0 }
 0x1ab   : > { %2118 = vst [vmem:[%s3192_s14 + $0x10] sm:$0xff] %v2360_v24  ;;  %v2361_v30 = vpack.c.bf16 %v2043_v17, %v2042_v23  ;;  %v1959_v32 = vpop.f32.mrb[10].mxu0 }
 0x1ac   : > { %v1961_v38 = vpop.f32.mrb[11].mxu0 }
 0x1ad   : > { %2119 = vst [vmem:[%s3192_s14 + $0x18] sm:$0xff] %v2361_v30 }
 0x1af   : > { %v1151_v31 = vpop.f32.mrb[8].mxu1 }
 0x1b0   : > { %v2384_v18 = vadd.f32 %v1955_v28, %v1151_v31  ;;  %v1153_v36 = vpop.f32.mrb[9].mxu1 }
 0x1b1   : > { %v2385_v39 = vadd.f32 %v1957_v15, %v1153_v36  ;;  %v1155_v27 = vpop.f32.mrb[10].mxu1  ;;  %v1965_v29 = vpop.f32.mrb[12].mxu0 }
 0x1b2   : > { %v2024_v55 = vadd.f32 %v2384_v18, %v3180_v35  ;;  %v2386_v4 = vadd.f32 %v1959_v32, %v1155_v27  ;;  %v1157_v6 = vpop.f32.mrb[11].mxu1  ;;  %v1967_v10 = vpop.f32.mrb[13].mxu0 }
 0x1b3   : > { %v2025_v8 = vadd.f32 %v2385_v39, %v3182_v19  ;;  %v2387_v12 = vadd.f32 %v1961_v38, %v1157_v6  ;;  %v1969_v50 = vpop.f32.mrb[14].mxu0 }
 0x1b4   : > { %v2044_v14 = vmax.f32 %v2024_v55, 0.0  ;;  %v2026_v16 = vadd.f32 %v2386_v4, %v3180_v35  ;;  %v1971_v62 = vpop.f32.mrb[15].mxu0 }
 0x1b5   : > { %v2045_v53 = vmax.f32 %v2025_v8, 0.0  ;;  %v2027_v48 = vadd.f32 %v2387_v12, %v3182_v19 }
 0x1b6   : > { %v2046_v13 = vmax.f32 %v2026_v16, 0.0 }
 0x1b7   : > { %v2362_v22 = vpack.c.bf16 %v2045_v53, %v2044_v14  ;;  %v2047_v0 = vmax.f32 %v2027_v48, 0.0  ;;  %v1161_v26 = vpop.f32.mrb[12].mxu1 }
 0x1b8   : > { %v2388_v7 = vadd.f32 %v1965_v29, %v1161_v26  ;;  %v1163_v47 = vpop.f32.mrb[13].mxu1 }
 0x1b9   : > { %2120 = vst [vmem:[%s3192_s14 + $0x20] sm:$0xff] %v2362_v22  ;;  %v2363_v54 = vpack.c.bf16 %v2047_v0, %v2046_v13  ;;  %v2389_v57 = vadd.f32 %v1967_v10, %v1163_v47  ;;  %v1165_v41 = vpop.f32.mrb[14].mxu1  ;;  %v1975_v37 = vpop.f32.mrb[16].mxu0 }
 0x1ba   : > { %v2028_v45 = vadd.f32 %v2388_v7, %v3180_v35  ;;  %v2390_v52 = vadd.f32 %v1969_v50, %v1165_v41  ;;  %v1167_v46 = vpop.f32.mrb[15].mxu1  ;;  %v1977_v49 = vpop.f32.mrb[17].mxu0 }
 0x1bb   : > { %2121 = vst [vmem:[%s3192_s14 + $0x28] sm:$0xff] %v2363_v54  ;;  %v2029_v25 = vadd.f32 %v2389_v57, %v3182_v19  ;;  %v2391_v40 = vadd.f32 %v1971_v62, %v1167_v46  ;;  %v1979_v43 = vpop.f32.mrb[18].mxu0 }
 0x1bc   : > { %v2048_v51 = vmax.f32 %v2028_v45, 0.0  ;;  %v2030_v11 = vadd.f32 %v2390_v52, %v3180_v35  ;;  %v1981_v2 = vpop.f32.mrb[19].mxu0 }
 0x1bd   : > { %v2049_v42 = vmax.f32 %v2029_v25, 0.0  ;;  %v2031_v63 = vadd.f32 %v2391_v40, %v3182_v19 }
 0x1be   : > { %v2050_v56 = vmax.f32 %v2030_v11, 0.0 }
 0x1bf   : > { %v2364_v34 = vpack.c.bf16 %v2049_v42, %v2048_v51  ;;  %v2051_v33 = vmax.f32 %v2031_v63, 0.0  ;;  %v1171_v58 = vpop.f32.mrb[16].mxu1 }
 0x1c0   : > { %v2392_v60 = vadd.f32 %v1975_v37, %v1171_v58  ;;  %v1173_v20 = vpop.f32.mrb[17].mxu1 }
 0x1c1   : > { %2122 = vst [vmem:[%s3192_s14 + $0x30] sm:$0xff] %v2364_v34  ;;  %v2365_v61 = vpack.c.bf16 %v2051_v33, %v2050_v56  ;;  %v2393_v3 = vadd.f32 %v1977_v49, %v1173_v20  ;;  %v1175_v5 = vpop.f32.mrb[18].mxu1 }
 0x1c2   : > { %v2032_v44 = vadd.f32 %v2392_v60, %v3180_v35  ;;  %v2394_v9 = vadd.f32 %v1979_v43, %v1175_v5  ;;  %v1177_v1 = vpop.f32.mrb[19].mxu1 }
 0x1c3   : > { %2123 = vst [vmem:[%s3192_s14 + $0x38] sm:$0xff] %v2365_v61  ;;  %v2033_v59 = vadd.f32 %v2393_v3, %v3182_v19  ;;  %v2395_v21 = vadd.f32 %v1981_v2, %v1177_v1 }
 0x1c4   : > { %v2052_v23 = vmax.f32 %v2032_v44, 0.0  ;;  %v2034_v24 = vadd.f32 %v2394_v9, %v3180_v35 }
 0x1c5   : > { %v2053_v17 = vmax.f32 %v2033_v59, 0.0  ;;  %v2035_v28 = vadd.f32 %v2395_v21, %v3182_v19 }
 0x1c6   : > { %v2054_v15 = vmax.f32 %v2034_v24, 0.0 }
 0x1c7   : > { %v2366_v30 = vpack.c.bf16 %v2053_v17, %v2052_v23  ;;  %v2055_v32 = vmax.f32 %v2035_v28, 0.0 }
 0x1c9   : > { %2124 = vst [vmem:[%s3192_s14 + $0x40] sm:$0xff] %v2366_v30  ;;  %v2367_v38 = vpack.c.bf16 %v2055_v32, %v2054_v15 }
 0x1cb   : > { %2125 = vst [vmem:[%s3192_s14 + $0x48] sm:$0x77] %v2367_v38 }
 0x1cc PF: > { %s14_s12 = sadd.s32 1, %s2733_s12  }
 0x1cd   : > { %p11_p3 = scmp.ge.s32.totalorder %s14_s12, 4  }
 0x1cf   :  { %13 = sbr.rel (!%p11_p3) target bundleno = 1 (0x1), region = 67 }
 0x1d6   :  { %2147 = vsyncpa [#allocation3], 1 }
 0x1d7   :  { %2149 = vsyncpa [#allocation3 + $0x1], 1 }

</bundles_post_ra>
